<compile_context>
chip_gen: v6e
topology: v6e:2x2x1
jax: 0.10.0
libtpu: 0.0.40
codegen_flags: <defaults>
</compile_context>

<pallas_src>
import jax
import jax.numpy as jnp
from jax.experimental import pallas as pl
from jax.experimental.pallas import tpu as pltpu


def _deconv_poly_kernel(x_ref, w_ref, b_ref, o_ref):
    """Fused polyphase matmul + bias + ReLU for one (batch, spatial-tile) step.

    x_ref: (1, 4*Cin, T)   bf16 neighbour-stacked activations (T spatial lanes)
    w_ref: (4*Cout, 4*Cin) bf16 polyphase weight matrix
    b_ref: (4*Cout, 1)     f32 bias (repeated once per output parity)
    o_ref: (1, 4*Cout, T)  bf16 output (parity-major channels, spatial lanes)
    """
    acc = jnp.dot(w_ref[...], x_ref[0],
                  preferred_element_type=jnp.float32)   # single deep MXU matmul, f32 acc
    acc = acc + b_ref[...]                              # bias broadcast over lanes
    # Cast to bf16 only after the f32 accumulation + ReLU (review #1).
    o_ref[...] = jnp.maximum(acc, 0.0)[None].astype(o_ref.dtype)


def _polyphase_weight(wt):
    """(Cin, Cout, 3, 3) ConvTranspose2d weight -> (4*Cout, 4*Cin) polyphase matrix.

    Rows are (row-parity, col-parity, out-channel); columns are
    (row-shift, col-shift, in-channel).  Blocks that never hit real data are zero.
    """
    Cin, Cout = wt.shape[0], wt.shape[1]
    # Equivalent direct-conv taps: w_conv[kh, kw, ci, co] = wt[ci, co, 2-kh, 2-kw]
    w_conv = jnp.flip(wt, axis=(2, 3)).transpose(2, 3, 0, 1)

    def tap(parity, shift):
        # Which 3x3 tap a given (output parity, input shift) pair uses, else None.
        if parity == 0:
            return 1 if shift == 0 else None
        return 0 if shift == 0 else 2

    wp = jnp.zeros((2, 2, Cout, 2, 2, Cin), jnp.float32)
    for pi in range(2):
        for pj in range(2):
            for di in range(2):
                for dj in range(2):
                    kh, kw = tap(pi, di), tap(pj, dj)
                    if kh is None or kw is None:
                        continue
                    wp = wp.at[pi, pj, :, di, dj, :].set(w_conv[kh, kw].T)
    return wp.reshape(4 * Cout, 4 * Cin)


def _vmem_limit_bytes():
    """Per-generation VMEM limit: ~60% of physical, capped (v5e/v6e 128 MiB, v7x 64 MiB)."""
    try:
        cap = pltpu.get_tpu_info().vmem_capacity_bytes
        return int(max(32 * 2**20, min(int(cap * 0.6), 100 * 2**20)))
    except Exception:
        return 48 * 2**20    # safe on every generation (<= v7x 64 MiB physical)


def _pick_spatial_tile(hw, cin4, cout4, n_batch, vmem_limit, requested=None):
    """Largest lane tile (multiple of 128) that fits the pipelined VMEM budget."""
    hw128 = pl.cdiv(hw, 128) * 128
    if requested is not None:
        tile = int(max(128, (min(requested, hw128) // 128) * 128))
    else:
        # Weights/bias are double-buffered by the pipeline even with a constant
        # index_map -> reserve 2x their footprint; rest goes to activation/output
        # tiles (also double-buffered, bf16).
        reserve = 2 * (cout4 * cin4 * 2 + cout4 * 4)
        budget = max(int(vmem_limit * 0.7) - reserve, 1 << 20)
        per_lane = 2 * (2 * cin4) + 2 * (2 * cout4)      # bytes per spatial lane
        tile = (budget // per_lane // 128) * 128
        tile = int(max(128, min(tile, 2048, hw128)))
    # Keep >= 2 grid steps when batch == 1 so both v7x TensorCores get work.
    if n_batch == 1 and hw128 > 128 and tile >= hw128:
        tile = int(max(128, (hw128 // 2 // 128) * 128))
    return tile


def deconv_block_forward(wt, bias, x_nchw, *, spatial_tile=None,
                         out_dtype=jnp.bfloat16):
    """DeConvBlock forward: ConvTranspose2d(k=3,s=2,p=1,out_pad=1) + ReLU, NCHW in/out.

    Returns bf16 by default (review #1/#4); pass out_dtype=jnp.float32 for f32.
    """
    N, Cin, H, W = x_nchw.shape
    Cout = wt.shape[1]
    HW = H * W
    cin4, cout4 = 4 * Cin, 4 * Cout

    vmem_limit = _vmem_limit_bytes()
    tile = _pick_spatial_tile(HW, cin4, cout4, N, vmem_limit, spatial_tile)
    hw_pad = pl.cdiv(max(HW, tile), tile) * tile

    # ---- wrapper-side layout plumbing (plain JAX, fused by XLA) -------------
    # Cast to bf16 BEFORE the pad/stack so the 4-way neighbour gather reads a
    # half-width stream (review #2; zero-pad commutes with the cast).
    xb = x_nchw.astype(jnp.bfloat16)
    xp = jnp.pad(xb, ((0, 0), (0, 0), (0, 1), (0, 1)))
    x4 = jnp.stack([xp[:, :, di:di + H, dj:dj + W]
                    for di in range(2) for dj in range(2)], axis=1)
    x4 = x4.reshape(N, cin4, HW)
    if hw_pad != HW:
        x4 = jnp.pad(x4, ((0, 0), (0, 0), (0, hw_pad - HW)))
    # NOTE (review #3 follow-up): the stack still costs ~4x activation reads plus
    # one bf16 round trip of the stacked buffer; a row-halo BlockSpec + in-kernel
    # pltpu.roll column shift would let the kernel read raw NCHW directly.

    w_poly = _polyphase_weight(wt).astype(jnp.bfloat16)              # (4*Cout, 4*Cin)
    b_poly = jnp.tile(bias.astype(jnp.float32), 4).reshape(cout4, 1)

    grid = (N, hw_pad // tile)
    flops = 2 * N * hw_pad * cout4 * cin4
    bytes_accessed = (N * cin4 * hw_pad * 2        # bf16 activations in
                      + cout4 * cin4 * 2 + cout4 * 4   # weights + bias
                      + N * cout4 * hw_pad * 2)    # bf16 output

    out = pl.pallas_call(
        _deconv_poly_kernel,
        out_shape=jax.ShapeDtypeStruct((N, cout4, hw_pad), jnp.bfloat16),
        grid_spec=pltpu.PrefetchScalarGridSpec(
            num_scalar_prefetch=0,
            grid=grid,
            in_specs=[
                pl.BlockSpec((1, cin4, tile), lambda n, s: (n, 0, s)),
                pl.BlockSpec((cout4, cin4), lambda n, s: (0, 0)),
                pl.BlockSpec((cout4, 1), lambda n, s: (0, 0)),
            ],
            out_specs=pl.BlockSpec((1, cout4, tile), lambda n, s: (n, 0, s)),
        ),
        compiler_params=pltpu.CompilerParams(
            dimension_semantics=("parallel", "parallel"),
            vmem_limit_bytes=vmem_limit,
        ),
        cost_estimate=pl.CostEstimate(flops=flops, transcendentals=0,
                                      bytes_accessed=bytes_accessed),
    )(x4, w_poly, b_poly)

    # (N, (pi, pj, co), i*W + j) -> NCHW (N, Cout, 2H, 2W); reassembly stays bf16
    # (review #4) so this pass moves half the bytes of the old f32 version.
    out = out[:, :, :HW].reshape(N, 2, 2, Cout, H, W)
    out = out.transpose(0, 3, 4, 1, 5, 2).reshape(N, Cout, 2 * H, 2 * W)
    return out.astype(out_dtype)


def init_deconv_block_params(key, in_channels, out_channels):
    """Deterministic synthetic init matching the PyTorch module's shapes."""
    k_w, k_b = jax.random.split(key)
    bound = 1.0 / jnp.sqrt(in_channels * 9.0)
    w = jax.random.uniform(k_w, (in_channels, out_channels, 3, 3),
                           jnp.float32, -bound, bound)
    b = jax.random.uniform(k_b, (out_channels,), jnp.float32, -bound, bound)
    return {"w": w, "b": b}


# ---- pure-JAX reference (sanity check only) ----------------------------------
def _deconv_block_ref(wt, bias, x_nchw):
    Cout = wt.shape[1]
    rhs = jnp.flip(wt, axis=(2, 3)).transpose(2, 3, 0, 1)   # (3,3,Cin,Cout) HWIO
    x_nhwc = jnp.transpose(x_nchw, (0, 2, 3, 1))
    out = jax.lax.conv_general_dilated(
        x_nhwc, rhs, window_strides=(1, 1), padding=((1, 2), (1, 2)),
        lhs_dilation=(2, 2), dimension_numbers=("NHWC", "HWIO", "NHWC"))
    out = jnp.maximum(out + bias.reshape(1, 1, 1, Cout), 0.0)
    return jnp.transpose(out, (0, 3, 1, 2))


if __name__ == "__main__":
    key = jax.random.PRNGKey(0)
    k_param, k_x = jax.random.split(key)

    N, in_channels, out_channels, H, W = 2, 4, 8, 16, 16
    params = init_deconv_block_params(k_param, in_channels, out_channels)
    x = jax.random.normal(k_x, (N, in_channels, H, W), jnp.float32)

    fwd = jax.jit(deconv_block_forward)
    out = jax.block_until_ready(fwd(params["w"], params["b"], x))
    assert out.shape == (N, out_channels, 2 * H, 2 * W), out.shape

    ref = jax.block_until_ready(_deconv_block_ref(params["w"], params["b"], x))
    # bf16 operands + bf16 output with f32 accumulation -> ~1e-2 relative budget.
    out_f32 = out.astype(jnp.float32)
    rel_err = float(jnp.max(jnp.abs(out_f32 - ref)) / (jnp.max(jnp.abs(ref)) + 1e-6))
    assert rel_err < 2e-2, f"mismatch vs reference, rel_err={rel_err}"

    print("KERNEL_OK")
</pallas_src>

<mosaic_0001>
module attributes {stable_mosaic.version = 11 : i64} {
  func.func @_deconv_poly_kernel(%arg0: i32, %arg1: i32, %arg2: memref<1x16x256xbf16, #tpu.memory_space<vmem>>, %arg3: memref<32x16xbf16, #tpu.memory_space<vmem>>, %arg4: memref<32x1xf32, #tpu.memory_space<vmem>>, %arg5: memref<1x32x256xbf16, #tpu.memory_space<vmem>>) attributes {dimension_semantics = [#tpu.dimension_semantics<parallel>, #tpu.dimension_semantics<parallel>], iteration_bounds = array<i64: 2, 1>, scalar_prefetch = 0 : i64, scratch_operands = 0 : i64, tpu.core_type = #tpu.core_type<tc>, window_params = [{transform_indices = @transform_0, window_bounds = array<i64: 1, 16, 256>}, {pipeline_mode = #tpu.pipeline_mode<synchronous>, transform_indices = @transform_1, window_bounds = array<i64: 32, 16>}, {pipeline_mode = #tpu.pipeline_mode<synchronous>, transform_indices = @transform_2, window_bounds = array<i64: 32, 1>}, {transform_indices = @transform_3, window_bounds = array<i64: 1, 32, 256>}]} {
    %c0 = arith.constant 0 : index
    %c0_0 = arith.constant 0 : index
    %0 = vector.load %arg3[%c0, %c0_0] : memref<32x16xbf16, #tpu.memory_space<vmem>>, vector<32x16xbf16>
    %c0_1 = arith.constant 0 : index
    %c0_2 = arith.constant 0 : index
    %c0_3 = arith.constant 0 : index
    %1 = vector.load %arg2[%c0_1, %c0_2, %c0_3] : memref<1x16x256xbf16, #tpu.memory_space<vmem>>, vector<1x16x256xbf16>
    %2 = vector.shape_cast %1 : vector<1x16x256xbf16> to vector<16x256xbf16>
    %cst = arith.constant dense<0.000000e+00> : vector<32x256xf32>
    %3 = tpu.matmul %0, %2, %cst {dimension_numbers = #tpu.dot_dimension_numbers<[1], [0], [0], [1], [0, 0, 1, 1], [], []>} : vector<32x16xbf16>, vector<16x256xbf16>, vector<32x256xf32> -> vector<32x256xf32>
    %c0_4 = arith.constant 0 : index
    %c0_5 = arith.constant 0 : index
    %4 = vector.load %arg4[%c0_4, %c0_5] : memref<32x1xf32, #tpu.memory_space<vmem>>, vector<32x1xf32>
    %5 = vector.broadcast %4 : vector<32x1xf32> to vector<32x256xf32>
    %6 = arith.addf %3, %5 : vector<32x256xf32>
    %cst_6 = arith.constant 0.000000e+00 : f32
    %7 = vector.broadcast %cst_6 : f32 to vector<32x256xf32>
    %8 = arith.maximumf %6, %7 : vector<32x256xf32>
    %9 = vector.shape_cast %8 : vector<32x256xf32> to vector<1x32x256xf32>
    %10 = arith.truncf %9 : vector<1x32x256xf32> to vector<1x32x256xbf16>
    %c0_7 = arith.constant 0 : index
    %c0_8 = arith.constant 0 : index
    %c0_9 = arith.constant 0 : index
    %11 = vector.load %arg5[%c0_7, %c0_8, %c0_9] : memref<1x32x256xbf16, #tpu.memory_space<vmem>>, vector<1x32x256xbf16>
    tpu.vector_store %arg5[%c0_7, %c0_8, %c0_9], %10 {strides = array<i32>} : memref<1x32x256xbf16, #tpu.memory_space<vmem>>, vector<1x32x256xbf16>,
    return
  }
  func.func @transform_0(%arg0: i32, %arg1: i32) -> (i32, i32, i32) {
    %c0_i32 = arith.constant 0 : i32
    %c0_i32_0 = arith.constant 0 : i32
    return %arg0, %c0_i32, %arg1 : i32, i32, i32
  }
  func.func @transform_1(%arg0: i32, %arg1: i32) -> (i32, i32) {
    %c0_i32 = arith.constant 0 : i32
    %c0_i32_0 = arith.constant 0 : i32
    %c0_i32_1 = arith.constant 0 : i32
    return %c0_i32, %c0_i32_0 : i32, i32
  }
  func.func @transform_2(%arg0: i32, %arg1: i32) -> (i32, i32) {
    %c0_i32 = arith.constant 0 : i32
    %c0_i32_0 = arith.constant 0 : i32
    %c0_i32_1 = arith.constant 0 : i32
    return %c0_i32, %c0_i32_0 : i32, i32
  }
  func.func @transform_3(%arg0: i32, %arg1: i32) -> (i32, i32, i32) {
    %c0_i32 = arith.constant 0 : i32
    %c0_i32_0 = arith.constant 0 : i32
    return %arg0, %c0_i32, %arg1 : i32, i32, i32
  }
}

</mosaic_0001>

<bundles_post_ra>
// kernel: tile.8
= control target key start
LH: loop header
LB: loop body
LE: loop exit
PB: predicated region body
PF: predicated region fallthrough
CT: control target
= control target key end

     0   :  { %s22_s0 = inlined_call_operand.vmem [shape: f32[8], index: 0, kind: input, shape index: {}]   ;;  %s23_s1 = inlined_call_operand.vmem [shape: f32[4,8], index: 1, kind: output, shape index: {}]  }
   0x1   :  { %v4_v0 = vld [vmem:[%s22_s0] ss:$0 sm:$0xff] }
   0x2   :  { %5 = vst [vmem:[%s23_s1] sm:$0xf] %v4_v0 }

// kernel: tile.0
= control target key start
LH: loop header
LB: loop body
LE: loop exit
PB: predicated region body
PF: predicated region fallthrough
CT: control target
= control target key end

     0   :  { %s67_s8 = smov 125   ;;  %vm8_vm0 = vcmask 7168   ;;  %s68_s11 = smov 126   ;;  %s118_s0 = inlined_call_operand.vmem [shape: f32[4,8], index: 0, kind: input, shape index: {}]   ;;  %s119_s1 = inlined_call_operand.vmem [shape: f32[32,1], index: 1, kind: output, shape index: {}]  }
   0x1   :  { %v5_v0 = vld [vmem:[%s118_s0] sm:$0xf]  ;;  %s66_s0 = smov 127   ;;  %s69_s12 = smov 124  }
   0x2   :  { %6 = vst [vmem:[#allocation0] sm:$0xf] %v5_v0  ;;  %s70_s13 = smov 123   ;;  %s71_s14 = smov 122  }
   0x3   :  { %s72_s15 = smov 121  }
   0x9   :  { %v10_v1 = vld [vmem:[#allocation0] sm:$0xf]  }
   0xa   :  { %v22_v2 = vld [vmem:[#allocation0] sm:$0xf]   ;;  %11 = vrot.lane.b32.xlu0 %v10_v1, %s66_s0 }
   0xb   :  { %23 = vrot.lane.b32.xlu1 %v22_v2, %s67_s8  ;;  %v16_v3 = vld [vmem:[#allocation0] sm:$0xf]  }
   0xc   :  { %v28_v4 = vld [vmem:[#allocation0] sm:$0xf]  }
   0xd   :  { %v7_v5 = vld [vmem:[#allocation0] sm:$0xf]  }
   0xe   :  { %9 = vst.msk [vmem:[%s119_s1] ss:$8 sm:$0xf] %vm8_vm0, %v7_v5   ;;  %17 = vrot.lane.b32.xlu0 %v16_v3, %s68_s11  ;;  %v34_v6 = vld [vmem:[#allocation0] sm:$0xf]  }
   0xf   :  { %29 = vrot.lane.b32.xlu1 %v28_v4, %s69_s12  ;;  %v40_v7 = vld [vmem:[#allocation0] sm:$0xf]  }
  0x10   :  { %v46_v8 = vld [vmem:[#allocation0] sm:$0xf]  }
  0x12   :  { %35 = vrot.lane.b32.xlu0 %v34_v6, %s70_s13 }
  0x13   :  { %41 = vrot.lane.b32.xlu1 %v40_v7, %s71_s14 }
  0x16   :  { %47 = vrot.lane.b32.xlu0 %v46_v8, %s72_s15 }
  0x7c   :  { %v12_v9 = vpop.permute.xlu0 %11  }
  0x7d   :  { %v24_v10 = vpop.permute.xlu1 %23   ;;  %52 = vst.msk [vmem:[%s119_s1 + $0x1] ss:$8 sm:$0xf] %vm8_vm0, %v12_v9  }
  0x7e   :  { %54 = vst.msk [vmem:[%s119_s1 + $0x3] ss:$8 sm:$0xf] %vm8_vm0, %v24_v10  }
  0x80   :  { %v18_v11 = vpop.permute.xlu0 %17  }
  0x81   :  { %v30_v12 = vpop.permute.xlu1 %29   ;;  %53 = vst.msk [vmem:[%s119_s1 + $0x2] ss:$8 sm:$0xf] %vm8_vm0, %v18_v11  }
  0x82   :  { %55 = vst.msk [vmem:[%s119_s1 + $0x4] ss:$8 sm:$0xf] %vm8_vm0, %v30_v12  }
  0x84   :  { %v36_v13 = vpop.permute.xlu0 %35  }
  0x85   :  { %v42_v14 = vpop.permute.xlu1 %41   ;;  %56 = vst.msk [vmem:[%s119_s1 + $0x5] ss:$8 sm:$0xf] %vm8_vm0, %v36_v13  }
  0x86   :  { %57 = vst.msk [vmem:[%s119_s1 + $0x6] ss:$8 sm:$0xf] %vm8_vm0, %v42_v14  }
  0x88   :  { %v48_v15 = vpop.permute.xlu0 %47  }
  0x89   :  { %58 = vst.msk [vmem:[%s119_s1 + $0x7] ss:$8 sm:$0xf] %vm8_vm0, %v48_v15  }

// kernel: deconv_block_forward.1
= control target key start
LH: loop header
LB: loop body
LE: loop exit
PB: predicated region body
PF: predicated region fallthrough
CT: control target
= control target key end

     0   :  { %s550_s12 = smov 0   ;;  %s552_s13 = smov 0   ;;  %s605_s0 = inlined_call_operand.vmem [shape: bf16[2,16,256], index: 0, kind: input, shape index: {}]   ;;  %s606_s1 = inlined_call_operand.vmem [shape: bf16[32,16], index: 1, kind: input, shape index: {}]   ;;  %s607_s2 = inlined_call_operand.vmem [shape: f32[32,1], index: 2, kind: input, shape index: {}]   ;;  %s608_s3 = inlined_call_operand.vmem [shape: bf16[2,32,256], index: 3, kind: output, shape index: {}]  }
   0x1   :  { %s554_s14 = smov 0  }
   0x2 LB: > { %s25_s15 = sadd.s32 1, %s523_s13  ;;  %p448_p0 = scmp.ge.s32.totalorder %s527_s14, 1  ;;  %s527_s14 = sphi %s554_s14, %s13_s14   ;;  %s523_s13 = sphi %s552_s13, %s610_s13   ;;  %s519_s12 = sphi %s550_s12, %s609_s12  }
   0x3   : > { %p27_p1 = scmp.ge.s32.totalorder %s25_s15, 2  ;;  %p158_p2 = scmp.lt.s32.totalorder %s527_s14, 3 }
   0x5   : > { %s612_s15 = smov (%p27_p1, %s25_s15), 0  ;;  %p159_p3 = pnand %p448_p0, %p158_p2 }
   0x6   : > { %p191_p4 = scmp.lt.s32.totalorder (!%p159_p3), %s519_s12, 1 }
   0x7   : > { %162 = sbr.rel (%p159_p3) target bundleno = 226 (0xe2), region = 32 }
   0xc   : > { %v529_v0 = vmov 0   ;;  %s614_s12 = smov (!%p191_p4, %s519_s12), 1  ;;  %v219_v1 = vld [vmem:[%s607_s2 + $0x10] sm:$0xff]  ;;  %v217_v2 = vld [vmem:[%s607_s2] sm:$0xff]  ;;  %v220_v3 = vld [vmem:[%s607_s2 + $0x18] sm:$0xff]  ;;  %vm261_vm0 = vcmask 130048  }
   0xd   : > { %300 = vmatprep.mubr.bf16.mxu0 %v529_v0  ;;  %310 = vmatprep.mubr.bf16.mxu1 %v529_v0  ;;  %s465_s20 = sshll.u32 %s614_s12, 4  ;;  %v218_v4 = vld [vmem:[%s607_s2 + $0x8] sm:$0xff]  ;;  %v503_v7 = vld [vmem:[%s606_s1] sm:$0xff]   ;;  %s466_s5 = sshll.u32 %s614_s12, 5 }
   0xe   : > { %499 = vset.pattern.permute.xlu1 %v529_v0  ;;  %498 = vset.pattern.permute.xlu0 %v529_v0  ;;  %s198_s27 = scalar_lea.vmem %s605_s0, %s465_s20  ;;  %v504_v8 = vld [vmem:[%s606_s1 + $0x8] sm:$0xff]   ;;  %s208_s8 = scalar_lea.vmem %s608_s3, %s466_s5 }
   0xf   : > { %233 = vperm.xlu1 %499, %v219_v1   ;;  %223 = vperm.xlu0 %498, %v217_v2   ;;  %v500_v5 = vld [vmem:[%s198_s27 + $0x4] ss:$8 sps:$4 sm:$0xff]   ;;  %v502_v6 = vld [vmem:[%s198_s27] ss:$8 sps:$4 sm:$0xff]  }
  0x10   : > { %282 = vmatprep.subr.bf16.mxu0 %v500_v5  ;;  %471 = vmatprep.subr.bf16.mxu1 %v500_v5 }
  0x11   : > { %283 = vmatpush1.bf16.msra.mxu0 %v502_v6  ;;  %472 = vmatpush1.bf16.msra.mxu1 %v502_v6 }
  0x13   : > { %238 = vperm.xlu1 %499, %v220_v3   ;;  %228 = vperm.xlu0 %498, %v218_v4  }
  0x14   : > { %457 = vmatmul.mubr.msk.bf16.vlgmr.msra.gmra.mxu0 %vm261_vm0, %v503_v7  ;;  %458 = vmatmul.mubr.msk.bf16.vlgmr.msra.gmra.mxu1 %vm261_vm0, %v504_v8 }
  0x8a   : > { %v234_v9 = vpop.permute.xlu1 %233  ;;  %v224_v10 = vpop.permute.xlu0 %223 }
  0x8e   : > { %v239_v23 = vpop.permute.xlu1 %238  ;;  %v229_v24 = vpop.permute.xlu0 %228 }
  0xd4   : > { %v302_v11 = vpop.f32.mrf.mxu0  ;;  %v312_v12 = vpop.f32.mrf.mxu1 }
  0xd5   : > { %v303_v13 = vadd.f32 %v302_v11, %v224_v10  ;;  %v313_v14 = vadd.f32 %v312_v12, %v234_v9 }
  0xd6   : > { %v304_v15 = vpop.f32.mrf.mxu0  ;;  %v314_v16 = vpop.f32.mrf.mxu1 }
  0xd7   : > { %v305_v17 = vadd.f32 %v304_v15, %v224_v10  ;;  %v315_v18 = vadd.f32 %v314_v16, %v234_v9  ;;  %v321_v21 = vmax.f32 %v303_v13, 0.0  ;;  %v325_v22 = vmax.f32 %v313_v14, 0.0 }
  0xd8   : > { %v306_v19 = vpop.f32.mrf.mxu0  ;;  %v316_v20 = vpop.f32.mrf.mxu1 }
  0xd9   : > { %v322_v25 = vmax.f32 %v305_v17, 0.0  ;;  %v326_v26 = vmax.f32 %v315_v18, 0.0  ;;  %v307_v27 = vadd.f32 %v306_v19, %v229_v24  ;;  %v317_v28 = vadd.f32 %v316_v20, %v239_v23 }
  0xda   : > { %v308_v29 = vpop.f32.mrf.mxu0  ;;  %v318_v30 = vpop.f32.mrf.mxu1 }
  0xdb   : > { %v467_v31 = vpack.c.bf16 %v322_v25, %v321_v21  ;;  %v469_v32 = vpack.c.bf16 %v326_v26, %v325_v22  ;;  %v309_v33 = vadd.f32 %v308_v29, %v229_v24  ;;  %v319_v34 = vadd.f32 %v318_v30, %v239_v23 }
  0xdc   : > { %v323_v35 = vmax.f32 %v307_v27, 0.0  ;;  %v327_v36 = vmax.f32 %v317_v28, 0.0 }
  0xdd   : > { %353 = vst [vmem:[%s208_s8] sm:$0xff] %v467_v31  ;;  %355 = vst [vmem:[%s208_s8 + $0x10] sm:$0xff] %v469_v32  ;;  %v324_v37 = vmax.f32 %v309_v33, 0.0  ;;  %v328_v38 = vmax.f32 %v319_v34, 0.0 }
  0xdf   : > { %v468_v39 = vpack.c.bf16 %v324_v37, %v323_v35  ;;  %v470_v40 = vpack.c.bf16 %v328_v38, %v327_v36 }
  0xe1   : > { %354 = vst [vmem:[%s208_s8 + $0x8] sm:$0xff] %v468_v39  ;;  %356 = vst [vmem:[%s208_s8 + $0x18] sm:$0xff] %v470_v40 }
  0xe2 PF: > { %s13_s14 = sadd.s32 1, %s527_s14   ;;  %s609_s12 = smov %s523_s13 }
  0xe3   : > { %p10_p5 = scmp.ge.s32.totalorder %s13_s14, 4   ;;  %s610_s13 = smov %s612_s15 }
  0xe5   :  { %12 = sbr.rel (!%p10_p5) target bundleno = 2 (0x2), region = 62 }

</bundles_post_ra>
